<compile_context>
chip_gen: v5e
topology: v5e:2x2
jax: 0.10.0
libtpu: 0.0.40
codegen_flags: <defaults>
</compile_context>

<pallas_src>
import jax
import jax.numpy as jnp
from jax import lax
from jax.experimental import pallas as pl
from jax.experimental.pallas import tpu as pltpu


def resblock_kernel(x_ref, w1_ref, w2_ref, shift1_ref, shift2_ref, o_ref):
    # Block shapes:
    #   x_ref      : (Nb, H, W*Cin)        mxu_dtype (bf16 in production)
    #   w1_ref     : (W*Cin, 4*W*Cout)     [band1_dy0 | band1_dy1 | band1_dy2 | band_res]
    #   w2_ref     : (W*Cout, 3*W*Cout)    [band2_dy0 | band2_dy1 | band2_dy2]
    #   shift1_ref : (1, W*Cout) f32       folded conv1 bias * s1 + BN1 shift
    #   shift2_ref : (1, W*Cout) f32       folded conv2 bias * s2 + BN2 shift + res bias
    #   o_ref      : (Nb, H, W*Cout) f32   lane-dense output rows
    nb, H, WCi = x_ref.shape
    WCo = o_ref.shape[-1]
    mxu_dtype = w1_ref.dtype

    zrow = jnp.zeros((nb, 1, WCo), jnp.float32)

    def tap_sum(t):
        # t: (Nb, H, 3*WCo) with per-dy tap outputs in 128-aligned lane blocks.
        # out[h] = t[h-1, dy0] + t[h, dy1] + t[h+1, dy2], zero outside H borders.
        up = jnp.concatenate([zrow, t[:, 0:H - 1, 0:WCo]], axis=1)
        mid = t[:, :, WCo:2 * WCo]
        down = jnp.concatenate([t[:, 1:H, 2 * WCo:3 * WCo], zrow], axis=1)
        return up + mid + down

    # ---- matmul 1: conv1 (3 dy taps) + residual 1x1, all as stacked outputs ----
    x = x_ref[...].reshape(nb * H, WCi)
    p = jnp.dot(x, w1_ref[...], preferred_element_type=jnp.float32)
    p = p.reshape(nb, H, 4 * WCo)

    s1 = shift1_ref[...].reshape(1, 1, WCo)
    y1 = jnp.maximum(tap_sum(p) + s1, 0.0)          # (Nb, H, WCo) f32
    res = p[:, :, 3 * WCo:4 * WCo]                   # residual path (kept f32)

    # ---- matmul 2: conv2 (3 dy taps as stacked outputs) ------------------------
    y1m = y1.astype(mxu_dtype).reshape(nb * H, WCo)  # single cast, stays in regs
    q = jnp.dot(y1m, w2_ref[...], preferred_element_type=jnp.float32)
    q = q.reshape(nb, H, 3 * WCo)

    s2 = shift2_ref[...].reshape(1, 1, WCo)
    o_ref[...] = jnp.maximum(tap_sum(q) + res + s2, 0.0)


def _conv3x3_to_bands(w, W):
    """HWIO (3,3,Ci,Co) kernel -> 3 banded matrices (3, W*Ci, W*Co).

    band[dy][w_in*Ci+ci, w_out*Co+co] = w[dy, w_in-w_out+1, ci, co] (zero outside
    the band), so a "same" 3x3 conv over a row layout (H, W*Ci) becomes
        out_rows[h] = sum_dy  rows[h+dy-1] @ band[dy]
    with W-boundary zero padding handled by the band structure itself.
    """
    _, _, Ci, Co = w.shape
    r = jnp.arange(W)
    bands = []
    for dy in range(3):
        m = jnp.zeros((W * Ci, W * Co), jnp.float32)
        for dx in range(3):
            sel = (r[:, None] == r[None, :] + (dx - 1)).astype(jnp.float32)
            m = m + jnp.kron(sel, w[dy, dx])
        bands.append(m)
    return jnp.stack(bands, axis=0)


def prepare_resblock_params(params, W, mxu_dtype=jnp.bfloat16):
    """One-time weight prep (hoisted off the per-call path).

    Folds conv biases + inference-mode BN scale/shift into the banded weights and
    two per-lane shift rows, and packs the taps into the two matmul RHS matrices.
    """
    Cout = params["w1"].shape[-1]
    s1_row = jnp.tile(params["s1"], (1, W))          # (1, W*Cout)
    s2_row = jnp.tile(params["s2"], (1, W))
    band1 = _conv3x3_to_bands(params["w1"], W) * s1_row    # BN1 scale folded
    band2 = _conv3x3_to_bands(params["w2"], W) * s2_row    # BN2 scale folded
    bandr = jnp.kron(jnp.eye(W, dtype=jnp.float32), params["wr"])  # 1x1 residual

    w1_packed = jnp.concatenate([band1[0], band1[1], band1[2], bandr],
                                axis=1).astype(mxu_dtype)   # (W*Cin, 4*W*Cout)
    w2_packed = jnp.concatenate([band2[0], band2[1], band2[2]],
                                axis=1).astype(mxu_dtype)   # (W*Cout, 3*W*Cout)
    shift1 = jnp.tile(params["b1"] * params["s1"] + params["t1"], (1, W))
    shift2 = jnp.tile(params["b2"] * params["s2"] + params["t2"] + params["br"],
                      (1, W))
    return dict(w1=w1_packed, w2=w2_packed, shift1=shift1, shift2=shift2,
                mxu_dtype=mxu_dtype, cout=Cout)


def resblock_apply(x_nhwc, prep, nb=None):
    N, H, W, Cin = x_nhwc.shape
    Cout = prep["cout"]
    WCi, WCo = W * Cin, W * Cout
    mxu_dtype = prep["mxu_dtype"]

    if nb is None:
        # Largest divisor of N up to 8 images per grid step (bigger Nb -> bigger
        # matmul M; for large N this still leaves >=2 steps per core on v7x).
        nb = max(d for d in range(1, min(N, 8) + 1) if N % d == 0)

    # Lane-dense row layout; x stored at the MXU dtype (halves DMA bytes for bf16).
    x_rows = x_nhwc.reshape(N, H, WCi).astype(mxu_dtype)

    const = lambda shape: pl.BlockSpec(shape, lambda n: (0,) * len(shape))

    grid_spec = pltpu.PrefetchScalarGridSpec(
        num_scalar_prefetch=0,
        grid=(N // nb,),                             # batch blocks, independent
        in_specs=[
            pl.BlockSpec((nb, H, WCi), lambda n: (n, 0, 0)),
            const((WCi, 4 * WCo)),    # packed conv1 + residual weights
            const((WCo, 3 * WCo)),    # packed conv2 weights
            const((1, WCo)),          # shift1
            const((1, WCo)),          # shift2 (incl. residual bias)
        ],
        out_specs=pl.BlockSpec((nb, H, WCo), lambda n: (n, 0, 0)),
    )

    out_rows = pl.pallas_call(
        resblock_kernel,
        out_shape=jax.ShapeDtypeStruct((N, H, WCo), jnp.float32),
        grid_spec=grid_spec,
        compiler_params=pltpu.CompilerParams(
            dimension_semantics=("parallel",),       # shard batch blocks across TCs
            vmem_limit_bytes=64 * 1024 * 1024,
        ),
    )(x_rows, prep["w1"], prep["w2"], prep["shift1"], prep["shift2"])

    return out_rows.reshape(N, H, W, Cout)


def ref_forward(x_nhwc, p):
    """Pure-JAX reference (lax.conv) with PyTorch ResBlock semantics."""
    dn = ("NHWC", "HWIO", "NHWC")
    y = lax.conv_general_dilated(x_nhwc, p["w1"], (1, 1), "SAME",
                                 dimension_numbers=dn) + p["b1"]
    y = y * p["s1"] + p["t1"]
    y = jnp.maximum(y, 0.0)
    y = lax.conv_general_dilated(y, p["w2"], (1, 1), "SAME",
                                 dimension_numbers=dn) + p["b2"]
    y = y * p["s2"] + p["t2"]
    r = lax.conv_general_dilated(x_nhwc, p["wr"][None, None], (1, 1), "SAME",
                                 dimension_numbers=dn) + p["br"]
    return jnp.maximum(y + r, 0.0)


def init_params(key, cin, cout):
    ks = jax.random.split(key, 10)
    eps = 1e-5
    w1 = 0.1 * jax.random.normal(ks[0], (3, 3, cin, cout), jnp.float32)
    b1 = 0.1 * jax.random.normal(ks[1], (1, cout), jnp.float32)
    w2 = 0.1 * jax.random.normal(ks[2], (3, 3, cout, cout), jnp.float32)
    b2 = 0.1 * jax.random.normal(ks[3], (1, cout), jnp.float32)
    wr = 0.1 * jax.random.normal(ks[4], (cin, cout), jnp.float32)
    br = 0.1 * jax.random.normal(ks[5], (1, cout), jnp.float32)
    # BatchNorm (inference-mode): fold gamma/beta/mean/var into scale/shift
    g1 = 1.0 + 0.1 * jax.random.normal(ks[6], (1, cout), jnp.float32)
    be1 = 0.1 * jax.random.normal(ks[7], (1, cout), jnp.float32)
    m1 = 0.05 * jax.random.normal(ks[8], (1, cout), jnp.float32)
    v1 = 1.0 + 0.1 * jnp.abs(jax.random.normal(ks[9], (1, cout), jnp.float32))
    s1 = g1 / jnp.sqrt(v1 + eps)
    t1 = be1 - m1 * s1
    # second BN: gamma=1, beta=0, mean=0, var=1 (fresh-module running stats)
    s2 = jnp.full((1, cout), 1.0 / jnp.sqrt(1.0 + eps), jnp.float32)
    t2 = jnp.zeros((1, cout), jnp.float32)
    return dict(w1=w1, b1=b1, s1=s1, t1=t1,
                w2=w2, b2=b2, s2=s2, t2=t2,
                wr=wr, br=br)


if __name__ == "__main__":
    N, Cin, Cout, H, W = 2, 4, 8, 16, 16
    key = jax.random.PRNGKey(0)
    kx, kp = jax.random.split(key)
    # PyTorch module sees NCHW; kernel uses NHWC row layout.
    x_nchw = jax.random.normal(kx, (N, Cin, H, W), jnp.float32)
    x_nhwc = jnp.transpose(x_nchw, (0, 2, 3, 1))
    params = init_params(kp, Cin, Cout)

    ref = ref_forward(x_nhwc, params)

    # Tight check: f32 MXU path must match the PyTorch-semantics reference.
    prep_f32 = prepare_resblock_params(params, W, mxu_dtype=jnp.float32)
    out_f32 = jax.block_until_ready(resblock_apply(x_nhwc, prep_f32))
    assert out_f32.shape == (N, H, W, Cout)
    assert jnp.allclose(out_f32, ref, atol=1e-4, rtol=1e-4), \
        f"f32 path max abs err {jnp.max(jnp.abs(out_f32 - ref))}"

    # Production path: bf16 activations/weights into the MXU, f32 accumulation.
    prep_bf16 = prepare_resblock_params(params, W, mxu_dtype=jnp.bfloat16)
    out_bf16 = jax.block_until_ready(resblock_apply(x_nhwc, prep_bf16))
    err = float(jnp.max(jnp.abs(out_bf16 - ref)))
    assert err < 1e-1, f"bf16 path max abs err {err}"

    print("KERNEL_OK")
</pallas_src>

<mosaic_0001>
module attributes {stable_mosaic.version = 11 : i64} {
  func.func @resblock_kernel(%arg0: i32, %arg1: memref<2x16x64xf32, #tpu.memory_space<vmem>>, %arg2: memref<64x512xf32, #tpu.memory_space<vmem>>, %arg3: memref<128x384xf32, #tpu.memory_space<vmem>>, %arg4: memref<1x128xf32, #tpu.memory_space<vmem>>, %arg5: memref<1x128xf32, #tpu.memory_space<vmem>>, %arg6: memref<2x16x128xf32, #tpu.memory_space<vmem>>) attributes {dimension_semantics = [#tpu.dimension_semantics<parallel>], iteration_bounds = array<i64: 1>, scalar_prefetch = 0 : i64, scratch_operands = 0 : i64, tpu.core_type = #tpu.core_type<tc>, window_params = [{transform_indices = @transform_0, window_bounds = array<i64: 2, 16, 64>}, {pipeline_mode = #tpu.pipeline_mode<synchronous>, transform_indices = @transform_1, window_bounds = array<i64: 64, 512>}, {pipeline_mode = #tpu.pipeline_mode<synchronous>, transform_indices = @transform_2, window_bounds = array<i64: 128, 384>}, {pipeline_mode = #tpu.pipeline_mode<synchronous>, transform_indices = @transform_3, window_bounds = array<i64: 1, 128>}, {pipeline_mode = #tpu.pipeline_mode<synchronous>, transform_indices = @transform_4, window_bounds = array<i64: 1, 128>}, {transform_indices = @transform_5, window_bounds = array<i64: 2, 16, 128>}]} {
    %cst = arith.constant 0.000000e+00 : f32
    %0 = vector.broadcast %cst : f32 to vector<2x1x128xf32>
    %c0 = arith.constant 0 : index
    %c0_0 = arith.constant 0 : index
    %c0_1 = arith.constant 0 : index
    %1 = vector.load %arg1[%c0, %c0_0, %c0_1] : memref<2x16x64xf32, #tpu.memory_space<vmem>>, vector<2x16x64xf32>
    %2 = vector.shape_cast %1 : vector<2x16x64xf32> to vector<32x64xf32>
    %c0_2 = arith.constant 0 : index
    %c0_3 = arith.constant 0 : index
    %3 = vector.load %arg2[%c0_2, %c0_3] : memref<64x512xf32, #tpu.memory_space<vmem>>, vector<64x512xf32>
    %cst_4 = arith.constant dense<0.000000e+00> : vector<32x512xf32>
    %4 = tpu.matmul %2, %3, %cst_4 {dimension_numbers = #tpu.dot_dimension_numbers<[1], [0], [0], [1], [0, 0, 1, 1], [], []>} : vector<32x64xf32>, vector<64x512xf32>, vector<32x512xf32> -> vector<32x512xf32>
    %5 = vector.shape_cast %4 : vector<32x512xf32> to vector<2x16x512xf32>
    %c0_5 = arith.constant 0 : index
    %c0_6 = arith.constant 0 : index
    %6 = vector.load %arg4[%c0_5, %c0_6] : memref<1x128xf32, #tpu.memory_space<vmem>>, vector<1x128xf32>
    %7 = vector.shape_cast %6 : vector<1x128xf32> to vector<1x1x128xf32>
    %8 = vector.extract_strided_slice %5 {offsets = [0, 0, 0], sizes = [2, 15, 128], strides = [1, 1, 1]} : vector<2x16x512xf32> to vector<2x15x128xf32>
    %9 = tpu.concatenate %0, %8 in 1 : vector<2x1x128xf32>, vector<2x15x128xf32> -> vector<2x16x128xf32>
    %10 = vector.extract_strided_slice %5 {offsets = [0, 0, 128], sizes = [2, 16, 128], strides = [1, 1, 1]} : vector<2x16x512xf32> to vector<2x16x128xf32>
    %11 = vector.extract_strided_slice %5 {offsets = [0, 1, 256], sizes = [2, 15, 128], strides = [1, 1, 1]} : vector<2x16x512xf32> to vector<2x15x128xf32>
    %12 = tpu.concatenate %11, %0 in 1 : vector<2x15x128xf32>, vector<2x1x128xf32> -> vector<2x16x128xf32>
    %13 = arith.addf %9, %10 : vector<2x16x128xf32>
    %14 = arith.addf %13, %12 : vector<2x16x128xf32>
    %15 = vector.broadcast %7 : vector<1x1x128xf32> to vector<2x16x128xf32>
    %16 = arith.addf %14, %15 : vector<2x16x128xf32>
    %cst_7 = arith.constant 0.000000e+00 : f32
    %17 = vector.broadcast %cst_7 : f32 to vector<2x16x128xf32>
    %18 = arith.maximumf %16, %17 : vector<2x16x128xf32>
    %19 = vector.extract_strided_slice %5 {offsets = [0, 0, 384], sizes = [2, 16, 128], strides = [1, 1, 1]} : vector<2x16x512xf32> to vector<2x16x128xf32>
    %20 = vector.shape_cast %18 : vector<2x16x128xf32> to vector<32x128xf32>
    %c0_8 = arith.constant 0 : index
    %c0_9 = arith.constant 0 : index
    %21 = vector.load %arg3[%c0_8, %c0_9] : memref<128x384xf32, #tpu.memory_space<vmem>>, vector<128x384xf32>
    %cst_10 = arith.constant dense<0.000000e+00> : vector<32x384xf32>
    %22 = tpu.matmul %20, %21, %cst_10 {dimension_numbers = #tpu.dot_dimension_numbers<[1], [0], [0], [1], [0, 0, 1, 1], [], []>} : vector<32x128xf32>, vector<128x384xf32>, vector<32x384xf32> -> vector<32x384xf32>
    %23 = vector.shape_cast %22 : vector<32x384xf32> to vector<2x16x384xf32>
    %c0_11 = arith.constant 0 : index
    %c0_12 = arith.constant 0 : index
    %24 = vector.load %arg5[%c0_11, %c0_12] : memref<1x128xf32, #tpu.memory_space<vmem>>, vector<1x128xf32>
    %25 = vector.shape_cast %24 : vector<1x128xf32> to vector<1x1x128xf32>
    %26 = vector.extract_strided_slice %23 {offsets = [0, 0, 0], sizes = [2, 15, 128], strides = [1, 1, 1]} : vector<2x16x384xf32> to vector<2x15x128xf32>
    %27 = tpu.concatenate %0, %26 in 1 : vector<2x1x128xf32>, vector<2x15x128xf32> -> vector<2x16x128xf32>
    %28 = vector.extract_strided_slice %23 {offsets = [0, 0, 128], sizes = [2, 16, 128], strides = [1, 1, 1]} : vector<2x16x384xf32> to vector<2x16x128xf32>
    %29 = vector.extract_strided_slice %23 {offsets = [0, 1, 256], sizes = [2, 15, 128], strides = [1, 1, 1]} : vector<2x16x384xf32> to vector<2x15x128xf32>
    %30 = tpu.concatenate %29, %0 in 1 : vector<2x15x128xf32>, vector<2x1x128xf32> -> vector<2x16x128xf32>
    %31 = arith.addf %27, %28 : vector<2x16x128xf32>
    %32 = arith.addf %31, %30 : vector<2x16x128xf32>
    %33 = arith.addf %32, %19 : vector<2x16x128xf32>
    %34 = vector.broadcast %25 : vector<1x1x128xf32> to vector<2x16x128xf32>
    %35 = arith.addf %33, %34 : vector<2x16x128xf32>
    %cst_13 = arith.constant 0.000000e+00 : f32
    %36 = vector.broadcast %cst_13 : f32 to vector<2x16x128xf32>
    %37 = arith.maximumf %35, %36 : vector<2x16x128xf32>
    %c0_14 = arith.constant 0 : index
    %c0_15 = arith.constant 0 : index
    %c0_16 = arith.constant 0 : index
    %38 = vector.load %arg6[%c0_14, %c0_15, %c0_16] : memref<2x16x128xf32, #tpu.memory_space<vmem>>, vector<2x16x128xf32>
    tpu.vector_store %arg6[%c0_14, %c0_15, %c0_16], %37 {strides = array<i32>} : memref<2x16x128xf32, #tpu.memory_space<vmem>>, vector<2x16x128xf32>,
    return
  }
  func.func @transform_0(%arg0: i32) -> (i32, i32, i32) {
    %c0_i32 = arith.constant 0 : i32
    %c0_i32_0 = arith.constant 0 : i32
    %c0_i32_1 = arith.constant 0 : i32
    return %arg0, %c0_i32, %c0_i32_0 : i32, i32, i32
  }
  func.func @transform_1(%arg0: i32) -> (i32, i32) {
    %c0_i32 = arith.constant 0 : i32
    %c0_i32_0 = arith.constant 0 : i32
    %c0_i32_1 = arith.constant 0 : i32
    return %c0_i32, %c0_i32_0 : i32, i32
  }
  func.func @transform_2(%arg0: i32) -> (i32, i32) {
    %c0_i32 = arith.constant 0 : i32
    %c0_i32_0 = arith.constant 0 : i32
    %c0_i32_1 = arith.constant 0 : i32
    return %c0_i32, %c0_i32_0 : i32, i32
  }
  func.func @transform_3(%arg0: i32) -> (i32, i32) {
    %c0_i32 = arith.constant 0 : i32
    %c0_i32_0 = arith.constant 0 : i32
    %c0_i32_1 = arith.constant 0 : i32
    return %c0_i32, %c0_i32_0 : i32, i32
  }
  func.func @transform_4(%arg0: i32) -> (i32, i32) {
    %c0_i32 = arith.constant 0 : i32
    %c0_i32_0 = arith.constant 0 : i32
    %c0_i32_1 = arith.constant 0 : i32
    return %c0_i32, %c0_i32_0 : i32, i32
  }
  func.func @transform_5(%arg0: i32) -> (i32, i32, i32) {
    %c0_i32 = arith.constant 0 : i32
    %c0_i32_0 = arith.constant 0 : i32
    %c0_i32_1 = arith.constant 0 : i32
    return %arg0, %c0_i32, %c0_i32_0 : i32, i32, i32
  }
}

</mosaic_0001>

<bundles_post_ra>
// kernel: tpu_custom_call.1
= control target key start
LH: loop header
LB: loop body
LE: loop exit
PB: predicated region body
PF: predicated region fallthrough
CT: control target
= control target key end

     0   :  { %10 = vsyncpa [#allocation3], 0  ;;  %s744_s0 = inlined_call_operand.hbm [shape: f32[2,16,64], index: 0, kind: input, shape index: {}]   ;;  %s745_s1 = inlined_call_operand.hbm [shape: f32[64,512], index: 1, kind: input, shape index: {}]   ;;  %s746_s2 = inlined_call_operand.hbm [shape: f32[128,384], index: 2, kind: input, shape index: {}]   ;;  %s747_s3 = inlined_call_operand.vmem [shape: f32[1,128], index: 3, kind: input, shape index: {}]   ;;  %s748_s4 = inlined_call_operand.vmem [shape: f32[1,128], index: 4, kind: input, shape index: {}]   ;;  %s749_s5 = inlined_call_operand.hbm [shape: f32[2,16,128], index: 5, kind: output, shape index: {}]  }
   0x1   :  { %11 = vsyncpa [#allocation6], 0  ;;  %s30_s20 = sshll.u32 %s745_s1, 4  ;;  %s31_s20 = int_to_ptr.hbm [resolvable:$true] %s30_s20 }
   0x2   :  { %12 = vsyncpa [#allocation4], 0  ;;  %s648_s21 = smov [#allocation5]   ;;  %s17_s25 = sshll.u32 %s744_s0, 4  ;;  %s18_s25 = int_to_ptr.hbm [resolvable:$true] %s17_s25 }
   0x3   :  { %s32_s22 = sshll.u32 %s648_s21, 4  ;;  %s649_s26 = smov 512   ;;  %s33_s22 = int_to_ptr.vmem [resolvable:$true] %s32_s22 }
   0x4   :  { %s650_s27 = smov 32   ;;  %s651_s28 = smov [#allocation2]  }
   0x5   :  { %38 = dma.hbm_to_vmem [thread:$0]  %s31_s20, 4096, %s33_s22, [#allocation6], %s649_s26, %s649_s26, %s650_s27  }
   0x6   :  { %s19_s29 = sshll.u32 %s651_s28, 4  ;;  %s652_s30 = smov 128   ;;  %s20_s29 = int_to_ptr.vmem [resolvable:$true] %s19_s29 }
   0x7   :  { %s653_s6 = smov 8   ;;  %s43_s8 = sshll.u32 %s746_s2, 4  ;;  %s44_s8 = int_to_ptr.hbm [resolvable:$true] %s43_s8 }
   0x8   :  { %25 = dma.hbm_to_vmem [thread:$0]  %s18_s25, 512, %s20_s29, [#allocation3], %s652_s30, %s652_s30, %s653_s6  }
   0x9   :  { %s654_s9 = smov [#allocation7]   ;;  %s655_s10 = smov 384  }
   0xa   :  { %s45_s0 = sshll.u32 %s654_s9, 4  ;;  %s656_s11 = smov 24   ;;  %s46_s0 = int_to_ptr.vmem [resolvable:$true] %s45_s0 }
   0xb   :  { %51 = dma.hbm_to_vmem [thread:$0]  %s44_s8, 6144, %s46_s0, [#allocation6], %s655_s10, %s655_s10, %s656_s11  }
   0xc   :  { %642 = dma.done.wait [#allocation3], 512  }
   0xd   :  { %643 = vsyncadd [#allocation3], 4294966784 }
   0xe   :  { %644 = dma.done.wait [#allocation6], 10240  }
   0xf   :  { %645 = vsyncadd [#allocation6], 4294957056  ;;  %v102_v0 = vld [vmem:[#allocation5 + $0xf0] sm:$0xff]  ;;  %v100_v2 = vld [vmem:[#allocation5 + $0xe0] sm:$0xff]  ;;  %vm104_vm0 = vcmask 523264   ;;  %vm238_vm1 = vcmask 1040384  }
  0x10   :  { %v98_v1 = vld [vmem:[#allocation5 + $0xd0] sm:$0xff]  ;;  %183 = vmatpush.msra.mxu2 %v102_v0  ;;  %125 = vmatpush.msra.mxu0 %v100_v2  ;;  %v96_v3 = vld [vmem:[#allocation5 + $0xc0] sm:$0xff]  ;;  %v101_v5 = vld [vmem:[#allocation5 + $0xe8] sm:$0xff]  ;;  %vm255_vm2 = vcmask 1046528   ;;  %s488_s17 = sshll.u32 %s749_s5, 4  ;;  %s489_s17 = int_to_ptr.hbm [resolvable:$true] %s488_s17 }
  0x11   :  { %v94_v4 = vld [vmem:[#allocation5 + $0xb0] sm:$0xff]  ;;  %v92_v6 = vld [vmem:[#allocation5 + $0xa0] sm:$0xff]  ;;  %v97_v7 = vld [vmem:[#allocation5 + $0xc8] sm:$0xff]  ;;  %154 = vmatpush.msra.mxu1 %v101_v5 }
  0x12   :  { %184 = vmatpush.msra.mxu2 %v98_v1  ;;  %126 = vmatpush.msra.mxu0 %v96_v3  ;;  %v90_v8 = vld [vmem:[#allocation5 + $0x90] sm:$0xff]  ;;  %v88_v9 = vld [vmem:[#allocation5 + $0x80] sm:$0xff]  ;;  %v93_v10 = vld [vmem:[#allocation5 + $0xa8] sm:$0xff] }
  0x13   :  { %v86_v11 = vld [vmem:[#allocation5 + $0x70] sm:$0xff]  ;;  %155 = vmatpush.msra.mxu1 %v97_v7  ;;  %v84_v12 = vld [vmem:[#allocation5 + $0x60] sm:$0xff]  ;;  %v89_v13 = vld [vmem:[#allocation5 + $0x88] sm:$0xff] }
  0x14   :  { %185 = vmatpush.msra.mxu2 %v94_v4  ;;  %127 = vmatpush.msra.mxu0 %v92_v6  ;;  %v82_v14 = vld [vmem:[#allocation5 + $0x50] sm:$0xff]  ;;  %v80_v15 = vld [vmem:[#allocation5 + $0x40] sm:$0xff]  ;;  %v85_v16 = vld [vmem:[#allocation5 + $0x68] sm:$0xff] }
  0x15   :  { %156 = vmatpush.msra.mxu1 %v93_v10  ;;  %v78_v17 = vld [vmem:[#allocation5 + $0x30] sm:$0xff]  ;;  %v76_v18 = vld [vmem:[#allocation5 + $0x20] sm:$0xff]  ;;  %v81_v19 = vld [vmem:[#allocation5 + $0x48] sm:$0xff] }
  0x16   :  { %186 = vmatpush.msra.mxu2 %v90_v8  ;;  %128 = vmatpush.msra.mxu0 %v88_v9  ;;  %v74_v20 = vld [vmem:[#allocation5 + $0x10] sm:$0xff]  ;;  %v72_v21 = vld [vmem:[#allocation5] sm:$0xff]  ;;  %v103_v22 = vld [vmem:[#allocation5 + $0xf8] sm:$0xff] }
  0x17   :  { %157 = vmatpush.msra.mxu1 %v89_v13  ;;  %v68_v23 = vld [vmem:[#allocation2] sm:$0xff]  ;;  %v77_v24 = vld [vmem:[#allocation5 + $0x28] sm:$0xff]  ;;  %212 = vmatpush.msra.mxu3 %v103_v22  ;;  %v99_v25 = vld [vmem:[#allocation5 + $0xd8] sm:$0xff] }
  0x18   :  { %187 = vmatpush.msra.mxu2 %v86_v11  ;;  %129 = vmatpush.msra.mxu0 %v84_v12  ;;  %v332_v26 = vld [vmem:[#allocation7 + $0x168] sm:$0xff]  ;;  %v334_v27 = vld [vmem:[#allocation7 + $0x178] sm:$0xff]  ;;  %v329_v30 = vld [vmem:[#allocation7 + $0x150] sm:$0xff] }
  0x19   :  { %158 = vmatpush.msra.mxu1 %v85_v16  ;;  %v73_v28 = vld [vmem:[#allocation5 + $0x8] sm:$0xff]  ;;  %v95_v29 = vld [vmem:[#allocation5 + $0xb8] sm:$0xff]  ;;  %213 = vmatpush.msra.mxu3 %v99_v25  ;;  %v333_v32 = vld [vmem:[#allocation7 + $0x170] sm:$0xff] }
  0x1a   :  { %188 = vmatpush.msra.mxu2 %v82_v14  ;;  %130 = vmatpush.msra.mxu0 %v80_v15  ;;  %v91_v31 = vld [vmem:[#allocation5 + $0x98] sm:$0xff]  ;;  %v331_v33 = vld [vmem:[#allocation7 + $0x160] sm:$0xff]  ;;  %v69_v37 = vld [vmem:[#allocation2 + $0x8] sm:$0xff] }
  0x1b   :  { %159 = vmatpush.msra.mxu1 %v81_v19  ;;  %214 = vmatpush.msra.mxu3 %v95_v29  ;;  %v326_v34 = vld [vmem:[#allocation7 + $0x138] sm:$0xff]  ;;  %v327_v39 = vld [vmem:[#allocation7 + $0x140] sm:$0xff]  ;;  %v328_v40 = vld [vmem:[#allocation7 + $0x148] sm:$0xff] }
  0x1c   :  { %189 = vmatpush.msra.mxu2 %v78_v17  ;;  %131 = vmatpush.msra.mxu0 %v76_v18  ;;  %v87_v35 = vld [vmem:[#allocation5 + $0x78] sm:$0xff]  ;;  %v323_v41 = vld [vmem:[#allocation7 + $0x120] sm:$0xff]  ;;  %v324_v43 = vld [vmem:[#allocation7 + $0x128] sm:$0xff] }
  0x1d   :  { %160 = vmatpush.msra.mxu1 %v77_v24  ;;  %v330_v36 = vld [vmem:[#allocation7 + $0x158] sm:$0xff]  ;;  %215 = vmatpush.msra.mxu3 %v91_v31  ;;  %v325_v44 = vld [vmem:[#allocation7 + $0x130] sm:$0xff]  ;;  %v320_v46 = vld [vmem:[#allocation7 + $0x108] sm:$0xff] }
  0x1e   :  { %190 = vmatpush.msra.mxu2 %v74_v20  ;;  %132 = vmatpush.msra.mxu0 %v72_v21  ;;  %v83_v38 = vld [vmem:[#allocation5 + $0x58] sm:$0xff]  ;;  %v321_v47 = vld [vmem:[#allocation7 + $0x110] sm:$0xff]  ;;  %v319_v52 = vld [vmem:[#allocation7 + $0x100] sm:$0xff] }
  0x1f   :  { %510 = vmatmul.msk.f32.vlgmr.msra.gmra.mxu2 %vm104_vm0, %v68_v23  ;;  %502 = vmatmul.msk.f32.vlgmr.msra.gmra.mxu0 %vm104_vm0, %v68_v23  ;;  %v79_v42 = vld [vmem:[#allocation5 + $0x38] sm:$0xff]  ;;  %v70_v49 = vld [vmem:[#allocation2 + $0x10] sm:$0xff]  ;;  %v315_v55 = vld [vmem:[#allocation7 + $0xe0] sm:$0xff] }
  0x20   :  { %335 = vmatpush.msrb.mxu0 %v332_v26  ;;  %393 = vmatpush.msrb.mxu2 %v334_v27  ;;  %v75_v45 = vld [vmem:[#allocation5 + $0x18] sm:$0xff]  ;;  %v317_v50 = vld [vmem:[#allocation7 + $0xf0] sm:$0xff]  ;;  %v316_v56 = vld [vmem:[#allocation7 + $0xe8] sm:$0xff] }
  0x21   :  { %161 = vmatpush.msra.mxu1 %v73_v28  ;;  %216 = vmatpush.msra.mxu3 %v87_v35  ;;  %v322_v48 = vld [vmem:[#allocation7 + $0x118] sm:$0xff]  ;;  %v311_v57 = vld [vmem:[#allocation7 + $0xc0] sm:$0xff]  ;;  %v312_v58 = vld [vmem:[#allocation7 + $0xc8] sm:$0xff] }
  0x22   :  { %506 = vmatmul.msk.f32.vlgmr.msra.gmra.mxu1 %vm104_vm0, %v68_v23  ;;  %336 = vmatpush.msrb.mxu0 %v329_v30  ;;  %v318_v51 = vld [vmem:[#allocation7 + $0xf8] sm:$0xff]  ;;  %v313_v59 = vld [vmem:[#allocation7 + $0xd0] sm:$0xff]  ;;  %v308_v60 = vld [vmem:[#allocation7 + $0xa8] sm:$0xff] }
  0x23   :  { %364 = vmatpush.msrb.mxu1 %v333_v32  ;;  %394 = vmatpush.msrb.mxu2 %v331_v33  ;;  %v71_v53 = vld [vmem:[#allocation2 + $0x18] sm:$0xff]  ;;  %v309_v61 = vld [vmem:[#allocation7 + $0xb0] sm:$0xff]  ;;  %v307_v1 = vld [vmem:[#allocation7 + $0xa0] sm:$0xff] }
  0x24   :  { %337 = vmatpush.msrb.mxu0 %v326_v34  ;;  %217 = vmatpush.msra.mxu3 %v83_v38  ;;  %v314_v54 = vld [vmem:[#allocation7 + $0xd8] sm:$0xff]  ;;  %v305_v63 = vld [vmem:[#allocation7 + $0x90] sm:$0xff]  ;;  %v303_v3 = vld [vmem:[#allocation7 + $0x80] sm:$0xff] }
  0x25   :  { %365 = vmatpush.msrb.mxu1 %v330_v36  ;;  %395 = vmatpush.msrb.mxu2 %v328_v40  ;;  %v310_v62 = vld [vmem:[#allocation7 + $0xb8] sm:$0xff]  ;;  %v304_v4 = vld [vmem:[#allocation7 + $0x88] sm:$0xff]  ;;  %v299_v5 = vld [vmem:[#allocation7 + $0x60] sm:$0xff] }
  0x26   :  { %338 = vmatpush.msrb.mxu0 %v323_v41  ;;  %218 = vmatpush.msra.mxu3 %v79_v42  ;;  %v306_v0 = vld [vmem:[#allocation7 + $0x98] sm:$0xff]  ;;  %v300_v6 = vld [vmem:[#allocation7 + $0x68] sm:$0xff]  ;;  %v301_v7 = vld [vmem:[#allocation7 + $0x70] sm:$0xff] }
  0x27   :  { %511 = vmatmul.msk.f32.gmra.mxu2 %vm104_vm0, %v69_v37  ;;  %503 = vmatmul.msk.f32.gmra.mxu0 %vm104_vm0, %v69_v37  ;;  %v302_v2 = vld [vmem:[#allocation7 + $0x78] sm:$0xff]  ;;  %v296_v8 = vld [vmem:[#allocation7 + $0x48] sm:$0xff]  ;;  %v297_v9 = vld [vmem:[#allocation7 + $0x50] sm:$0xff] }
  0x28   :  { %366 = vmatpush.msrb.mxu1 %v327_v39  ;;  %396 = vmatpush.msrb.mxu2 %v325_v44  ;;  %v298_v10 = vld [vmem:[#allocation7 + $0x58] sm:$0xff]  ;;  %v293_v11 = vld [vmem:[#allocation7 + $0x30] sm:$0xff]  ;;  %v295_v13 = vld [vmem:[#allocation7 + $0x40] sm:$0xff] }
  0x29   :  { %219 = vmatpush.msra.mxu3 %v75_v45  ;;  %339 = vmatpush.msrb.mxu0 %v320_v46  ;;  %v294_v12 = vld [vmem:[#allocation7 + $0x38] sm:$0xff]  ;;  %v291_v15 = vld [vmem:[#allocation7 + $0x20] sm:$0xff]  ;;  %v292_v16 = vld [vmem:[#allocation7 + $0x28] sm:$0xff] }
  0x2a   :  { %367 = vmatpush.msrb.mxu1 %v324_v43  ;;  %514 = vmatmul.msk.f32.vlgmr.msra.gmra.mxu3 %vm104_vm0, %v68_v23  ;;  %v290_v14 = vld [vmem:[#allocation7 + $0x18] sm:$0xff]  ;;  %v287_v17 = vld [vmem:[#allocation7] sm:$0xff]  ;;  %v288_v18 = vld [vmem:[#allocation7 + $0x8] sm:$0xff] }
  0x2b   :  { %507 = vmatmul.msk.f32.gmra.mxu1 %vm104_vm0, %v69_v37  ;;  %518 = vmatpush.msrb.mxu3 %v332_v26  ;;  %v289_v19 = vld [vmem:[#allocation7 + $0x10] sm:$0xff]  ;;  %v544_v35 = vld [vmem:[%s747_s3] ss:$0 sm:$0xff] }
  0x2c   :  { %368 = vmatpush.msrb.mxu1 %v321_v47  ;;  %397 = vmatpush.msrb.mxu2 %v322_v48 }
  0x2d   :  { %519 = vmatpush.msrb.mxu3 %v329_v30  ;;  %340 = vmatpush.msrb.mxu0 %v317_v50 }
  0x2e   :  { %369 = vmatpush.msrb.mxu1 %v318_v51  ;;  %398 = vmatpush.msrb.mxu2 %v319_v52 }
  0x2f   :  { %512 = vmatmul.msk.f32.gmra.mxu2 %vm104_vm0, %v70_v49  ;;  %504 = vmatmul.msk.f32.gmra.mxu0 %vm104_vm0, %v70_v49 }
  0x30   :  { %520 = vmatpush.msrb.mxu3 %v326_v34  ;;  %341 = vmatpush.msrb.mxu0 %v314_v54 }
  0x31   :  { %370 = vmatpush.msrb.mxu1 %v315_v55  ;;  %399 = vmatpush.msrb.mxu2 %v316_v56 }
  0x32   :  { %521 = vmatpush.msrb.mxu3 %v323_v41  ;;  %342 = vmatpush.msrb.mxu0 %v311_v57 }
  0x33   :  { %508 = vmatmul.msk.f32.gmra.mxu1 %vm104_vm0, %v70_v49  ;;  %515 = vmatmul.msk.f32.gmra.mxu3 %vm104_vm0, %v69_v37 }
  0x34   :  { %522 = vmatpush.msrb.mxu3 %v320_v46  ;;  %371 = vmatpush.msrb.mxu1 %v312_v58 }
  0x35   :  { %400 = vmatpush.msrb.mxu2 %v313_v59  ;;  %343 = vmatpush.msrb.mxu0 %v308_v60 }
  0x36   :  { %523 = vmatpush.msrb.mxu3 %v317_v50  ;;  %372 = vmatpush.msrb.mxu1 %v309_v61 }
  0x37   :  { %513 = vmatmul.msk.f32.gmra.mxu2 %vm104_vm0, %v71_v53  ;;  %505 = vmatmul.msk.f32.gmra.mxu0 %vm104_vm0, %v71_v53 }
  0x38   :  { %524 = vmatpush.msrb.mxu3 %v314_v54  ;;  %401 = vmatpush.msrb.mxu2 %v310_v62 }
  0x39   :  { %344 = vmatpush.msrb.mxu0 %v305_v63  ;;  %373 = vmatpush.msrb.mxu1 %v306_v0 }
  0x3a   :  { %525 = vmatpush.msrb.mxu3 %v311_v57  ;;  %402 = vmatpush.msrb.mxu2 %v307_v1 }
  0x3b   :  { %509 = vmatmul.msk.f32.gmra.mxu1 %vm104_vm0, %v71_v53  ;;  %516 = vmatmul.msk.f32.gmra.mxu3 %vm104_vm0, %v70_v49 }
  0x3c   :  { %526 = vmatpush.msrb.mxu3 %v308_v60  ;;  %345 = vmatpush.msrb.mxu0 %v302_v2 }
  0x3d   :  { %374 = vmatpush.msrb.mxu1 %v303_v3  ;;  %403 = vmatpush.msrb.mxu2 %v304_v4 }
  0x3e   :  { %527 = vmatpush.msrb.mxu3 %v305_v63  ;;  %346 = vmatpush.msrb.mxu0 %v299_v5 }
  0x3f   :  { %375 = vmatpush.msrb.mxu1 %v300_v6  ;;  %404 = vmatpush.msrb.mxu2 %v301_v7 }
  0x40   :  { %528 = vmatpush.msrb.mxu3 %v302_v2  ;;  %347 = vmatpush.msrb.mxu0 %v296_v8 }
  0x41   :  { %376 = vmatpush.msrb.mxu1 %v297_v9  ;;  %405 = vmatpush.msrb.mxu2 %v298_v10 }
  0x42   :  { %529 = vmatpush.msrb.mxu3 %v299_v5  ;;  %348 = vmatpush.msrb.mxu0 %v293_v11 }
  0x43   :  { %517 = vmatmul.msk.f32.gmra.mxu3 %vm104_vm0, %v71_v53  ;;  %377 = vmatpush.msrb.mxu1 %v294_v12 }
  0x44   :  { %530 = vmatpush.msrb.mxu3 %v296_v8  ;;  %406 = vmatpush.msrb.mxu2 %v295_v13 }
  0x45   :  { %349 = vmatpush.msrb.mxu0 %v290_v14  ;;  %378 = vmatpush.msrb.mxu1 %v291_v15 }
  0x46   :  { %531 = vmatpush.msrb.mxu3 %v293_v11  ;;  %407 = vmatpush.msrb.mxu2 %v292_v16 }
  0x47   :  { %350 = vmatpush.msrb.mxu0 %v287_v17  ;;  %379 = vmatpush.msrb.mxu1 %v288_v18 }
  0x48   :  { %532 = vmatpush.msrb.mxu3 %v290_v14  ;;  %408 = vmatpush.msrb.mxu2 %v289_v19 }
  0x4a   :  { %533 = vmatpush.msrb.mxu3 %v287_v17 }
  0x9c   :  { %v134_v20 = vpop.f32.mrf.mxu0 }
  0x9d   :  { %v239_v23 = vrot.slane %v134_v20, 7 }
  0x9f   :  { %v163_v21 = vpop.f32.mrf.mxu1  ;;  %v249_v26 = vsel %vm238_vm1, 0.0, %v239_v23 }
  0xa0   :  { %v268_v29 = vadd.f32 %v249_v26, %v163_v21 }
  0xa2   :  { %v192_v22 = vpop.f32.mrf.mxu2 }
  0xa3   :  { %v256_v32 = vrot.slane %v192_v22, 1 }
  0xa4   :  { %v137_v24 = vpop.f32.mrf.mxu0 }
  0xa5   :  { %v240_v25 = vrot.slane %v137_v24, 7 }
  0xa7   :  { %v241_v27 = vsel %vm238_vm1, %v239_v23, %v240_v25  ;;  %v545_v23 = vld [vmem:[%s748_s4] ss:$0 sm:$0xff]  ;;  %s657_s4 = smov [#allocation8]  }
  0xa8   :  { %v166_v28 = vpop.f32.mrf.mxu1  ;;  %s486_s14 = sshll.u32 %s657_s4, 4  ;;  %s487_s14 = int_to_ptr.vmem [resolvable:$true] %s486_s14 }
  0xa9   :  { %v269_v31 = vadd.f32 %v241_v27, %v166_v28 }
  0xaa   :  { %v195_v30 = vpop.f32.mrf.mxu2 }
  0xab   :  { %v257_v33 = vrot.slane %v195_v30, 1 }
  0xac   :  { %v140_v34 = vpop.f32.mrf.mxu0 }
  0xad   :  { %v258_v36 = vsel %vm255_vm2, %v256_v32, %v257_v33  ;;  %v266_v37 = vsel %vm255_vm2, %v257_v33, 0.0  ;;  %v242_v46 = vrot.slane %v140_v34, 7  ;;  %v221_v1 = vpop.f32.mrf.mxu3 }
  0xae   :  { %v272_v38 = vadd.f32 %v268_v29, %v258_v36  ;;  %v273_v39 = vadd.f32 %v269_v31, %v266_v37 }
  0xaf   :  { %v250_v48 = vsel %vm238_vm1, 0.0, %v242_v46 }
  0xb0   :  { %v279_v40 = vadd.f32 %v544_v35, %v272_v38  ;;  %v280_v41 = vadd.f32 %v544_v35, %v273_v39  ;;  %v169_v42 = vpop.f32.mrf.mxu1 }
  0xb1   :  { %v270_v50 = vadd.f32 %v250_v48, %v169_v42 }
  0xb2   :  { %v198_v43 = vpop.f32.mrf.mxu2  ;;  %v283_v44 = vmax.f32 %v279_v40, 0.0  ;;  %v284_v45 = vmax.f32 %v280_v41, 0.0 }
  0xb3   :  { %v259_v52 = vrot.slane %v198_v43, 1 }
  0xb4   :  { %351 = vmatmul.f32.vlgmr.msrb.gmra.mxu0 %v283_v44  ;;  %354 = vmatmul.f32.vlgmr.msrb.gmra.mxu3 %v284_v45  ;;  %v143_v47 = vpop.f32.mrf.mxu0 }
  0xb5   :  { %380 = vmatmul.f32.vlgmr.msrb.gmra.mxu1 %v283_v44  ;;  %409 = vmatmul.f32.vlgmr.msrb.gmra.mxu2 %v283_v44  ;;  %v243_v49 = vrot.slane %v143_v47, 7 }
  0xb6   :  { %v224_v2 = vpop.f32.mrf.mxu3 }
  0xb7   :  { %v244_v55 = vsel %vm238_vm1, %v242_v46, %v243_v49 }
  0xb8   :  { %v172_v54 = vpop.f32.mrf.mxu1 }
  0xb9   :  { %v271_v58 = vadd.f32 %v244_v55, %v172_v54 }
  0xba   :  { %v201_v51 = vpop.f32.mrf.mxu2 }
  0xbb   :  { %v260_v53 = vrot.slane %v201_v51, 1 }
  0xbd   :  { %v261_v56 = vsel %vm255_vm2, %v259_v52, %v260_v53  ;;  %383 = vmatmul.f32.gmra.mxu1 %v284_v45  ;;  %412 = vmatmul.f32.gmra.mxu2 %v284_v45  ;;  %v267_v59 = vsel %vm255_vm2, %v260_v53, 0.0 }
  0xbe   :  { %v274_v57 = vadd.f32 %v270_v50, %v261_v56  ;;  %v275_v61 = vadd.f32 %v271_v58, %v267_v59  ;;  %v227_v3 = vpop.f32.mrf.mxu3 }
  0xc0   :  { %v281_v60 = vadd.f32 %v544_v35, %v274_v57  ;;  %v282_v63 = vadd.f32 %v544_v35, %v275_v61 }
  0xc2   :  { %v285_v62 = vmax.f32 %v281_v60, 0.0  ;;  %v286_v0 = vmax.f32 %v282_v63, 0.0 }
  0xc4   :  { %357 = vmatmul.f32.gmra.mxu3 %v285_v62 }
  0xc5   :  { %386 = vmatmul.f32.gmra.mxu1 %v285_v62  ;;  %415 = vmatmul.f32.gmra.mxu2 %v285_v62 }
  0xc6   :  { %v230_v4 = vpop.f32.mrf.mxu3 }
  0xcc   :  { %360 = vmatmul.f32.gmra.mxu3 %v286_v0 }
  0xcd   :  { %389 = vmatmul.f32.gmra.mxu1 %v286_v0  ;;  %418 = vmatmul.f32.gmra.mxu2 %v286_v0 }
 0x131   :  { %v352_v6 = vpop.f32.mrf.mxu0 }
 0x132   :  { %v381_v5 = vpop.f32.mrf.mxu1  ;;  %v427_v9 = vrot.slane %v352_v6, 7 }
 0x134   :  { %v437_v12 = vsel %vm238_vm1, 0.0, %v427_v9 }
 0x135   :  { %v455_v17 = vadd.f32 %v437_v12, %v381_v5 }
 0x137   :  { %v355_v7 = vpop.f32.mrf.mxu3 }
 0x138   :  { %v410_v8 = vpop.f32.mrf.mxu2  ;;  %v428_v10 = vrot.slane %v355_v7, 7 }
 0x139   :  { %v443_v15 = vrot.slane %v410_v8, 1 }
 0x13a   :  { %v384_v11 = vpop.f32.mrf.mxu1  ;;  %v429_v13 = vsel %vm238_vm1, %v427_v9, %v428_v10 }
 0x13b   :  { %v456_v18 = vadd.f32 %v429_v13, %v384_v11 }
 0x140   :  { %v413_v14 = vpop.f32.mrf.mxu2 }
 0x141   :  { %v444_v16 = vrot.slane %v413_v14, 1 }
 0x142   :  { %v387_v29 = vpop.f32.mrf.mxu1 }
 0x143   :  { %v445_v19 = vsel %vm255_vm2, %v443_v15, %v444_v16  ;;  %v453_v20 = vsel %vm255_vm2, %v444_v16, 0.0 }
 0x144   :  { %v459_v21 = vadd.f32 %v455_v17, %v445_v19  ;;  %v460_v22 = vadd.f32 %v456_v18, %v453_v20 }
 0x146   :  { %v463_v24 = vadd.f32 %v459_v21, %v221_v1  ;;  %v464_v25 = vadd.f32 %v460_v22, %v224_v2 }
 0x147   :  { %v358_v26 = vpop.f32.mrf.mxu3 }
 0x148   :  { %v470_v27 = vadd.f32 %v545_v23, %v463_v24  ;;  %v471_v28 = vadd.f32 %v545_v23, %v464_v25  ;;  %v416_v30 = vpop.f32.mrf.mxu2  ;;  %v430_v33 = vrot.slane %v358_v26, 7 }
 0x149   :  { %v446_v38 = vrot.slane %v416_v30, 1 }
 0x14a   :  { %v474_v31 = vmax.f32 %v470_v27, 0.0  ;;  %v475_v32 = vmax.f32 %v471_v28, 0.0  ;;  %v438_v34 = vsel %vm238_vm1, 0.0, %v430_v33  ;;  %v390_v41 = vpop.f32.mrf.mxu1 }
 0x14b   :  { %v457_v40 = vadd.f32 %v438_v34, %v387_v29 }
 0x14c   :  { %479 = vst [vmem:[#allocation8 + $0x8] sm:$0xff] %v475_v32 }
 0x14d   :  { %478 = vst [vmem:[#allocation8] sm:$0xff] %v474_v31 }
 0x14f   :  { %v361_v35 = vpop.f32.mrf.mxu3 }
 0x150   :  { %v431_v36 = vrot.slane %v361_v35, 7  ;;  %v419_v37 = vpop.f32.mrf.mxu2 }
 0x151   :  { %v447_v39 = vrot.slane %v419_v37, 1 }
 0x152   :  { %v432_v42 = vsel %vm238_vm1, %v430_v33, %v431_v36 }
 0x153   :  { %v448_v43 = vsel %vm255_vm2, %v446_v38, %v447_v39  ;;  %v458_v44 = vadd.f32 %v432_v42, %v390_v41  ;;  %v454_v45 = vsel %vm255_vm2, %v447_v39, 0.0 }
 0x154   :  { %v461_v46 = vadd.f32 %v457_v40, %v448_v43 }
 0x155   :  { %v462_v47 = vadd.f32 %v458_v44, %v454_v45 }
 0x156   :  { %v465_v48 = vadd.f32 %v461_v46, %v227_v3 }
 0x157   :  { %v466_v49 = vadd.f32 %v462_v47, %v230_v4 }
 0x158   :  { %v472_v50 = vadd.f32 %v545_v23, %v465_v48 }
 0x159   :  { %v473_v51 = vadd.f32 %v545_v23, %v466_v49 }
 0x15a   :  { %v476_v52 = vmax.f32 %v472_v50, 0.0 }
 0x15b   :  { %v477_v53 = vmax.f32 %v473_v51, 0.0 }
 0x15c   :  { %480 = vst [vmem:[#allocation8 + $0x10] sm:$0xff] %v476_v52 }
 0x15d   :  { %481 = vst [vmem:[#allocation8 + $0x18] sm:$0xff] %v477_v53 }
 0x15e   :  { %494 = dma.vmem_to_hbm [thread:$0]  %s487_s14, 512, %s489_s17, [#allocation4], %s652_s30, %s652_s30, %s653_s6  }
 0x15f   :  { %646 = dma.done.wait [#allocation4], 512  }
 0x160   :  { %647 = vsyncadd [#allocation4], 4294966784 }
 0x161   :  { %499 = vsyncpa [#allocation3], 1 }
 0x162   :  { %500 = vsyncpa [#allocation6], 1 }
 0x163   :  { %501 = vsyncpa [#allocation4], 1 }

</bundles_post_ra>
